<compile_context>
chip_gen: v7x
topology: tpu7x:2x2x1
jax: 0.10.0
libtpu: 0.0.40
codegen_flags: <defaults>
</compile_context>

<pallas_src>
import functools

import jax
import jax.numpy as jnp
from jax.experimental import pallas as pl
from jax.experimental.pallas import tpu as pltpu

HIDDEN1_UNITS = 300
HIDDEN2_UNITS = 600


def _round_up(n, m):
    return (n + m - 1) // m * m


def _pad2(a, rows, cols):
    r, c = a.shape
    return jnp.pad(a, ((0, rows - r), (0, cols - c)))


# --------------------------------------------------------------------------
# Kernel
# --------------------------------------------------------------------------
def actor_kernel(x_ref, w1_ref, b1_ref, w2_ref, b2_ref, wh_ref, bh_ref,
                 out_ref, *, action_dim):
    # fc1 + relu   (bf16 inputs, f32 MXU accumulation)
    h1 = jnp.dot(x_ref[...], w1_ref[...], preferred_element_type=jnp.float32)
    h1 = jnp.maximum(h1 + b1_ref[...], 0.0).astype(jnp.bfloat16)
    # fc2 + relu
    h2 = jnp.dot(h1, w2_ref[...], preferred_element_type=jnp.float32)
    h2 = jnp.maximum(h2 + b2_ref[...], 0.0).astype(jnp.bfloat16)
    # fused heads: one wide matmul into a lane-dense 128-wide output slab
    z = jnp.dot(h2, wh_ref[...], preferred_element_type=jnp.float32) + bh_ref[...]

    lane = jax.lax.broadcasted_iota(jnp.int32, z.shape, dimension=1)
    is_mu = lane < action_dim
    # Single-exp epilogue:
    #   mu lanes : tanh(z) = (exp(2z) - 1) / (exp(2z) + 1)   (2z clipped so the
    #              exp stays finite; tanh saturates to 1.0 well before |z|=20)
    #   std lanes: exp(softplus(z)) == 1 + exp(z)            (exact identity;
    #              overflows to inf exactly where the reference does)
    w = jnp.where(is_mu, jnp.clip(2.0 * z, -40.0, 40.0), z)
    e = jnp.exp(w)
    mu = (e - 1.0) * pl.reciprocal(e + 1.0, approx=True)
    out = jnp.where(is_mu, mu, 1.0 + e)
    out_ref[...] = out.astype(out_ref.dtype)


# --------------------------------------------------------------------------
# Param packing: fuse heads, pad to lane-aligned sizes, cast weights to bf16.
# Call ONCE (outside the hot path) and reuse the result for every forward.
# --------------------------------------------------------------------------
def pack_params(params):
    (w1, b1, w2, b2, wmu, bmu, wls, bls) = params
    S, H1 = w1.shape
    H2 = w2.shape[1]
    A = wmu.shape[1]

    H1P = _round_up(H1, 128)          # 300 -> 384
    H2P = _round_up(H2, 128)          # 600 -> 640
    HEADP = _round_up(2 * A, 128)     # lane-dense output slab width

    w1p = _pad2(w1, S, H1P).astype(jnp.bfloat16)
    b1p = _pad2(b1, 1, H1P)                                   # biases stay f32
    w2p = _pad2(w2, H1P, H2P).astype(jnp.bfloat16)
    b2p = _pad2(b2, 1, H2P)
    wh = jnp.concatenate([wmu, wls], axis=1)                  # (H2, 2A)
    bh = jnp.concatenate([bmu, bls], axis=1)                  # (1, 2A)
    whp = _pad2(wh, H2P, HEADP).astype(jnp.bfloat16)
    bhp = _pad2(bh, 1, HEADP)
    return {"tensors": (w1p, b1p, w2p, b2p, whp, bhp), "action_dim": int(A)}


# --------------------------------------------------------------------------
# Wrapper
# --------------------------------------------------------------------------
def _choose_tile(B, batch_tile):
    # Tile multiple of 16 (bf16 sublanes); keep >= 2 grid steps when possible
    # so the "parallel" axis can shard across v7x's two TensorCores.
    half = _round_up(max(1, -(-B // 2)), 16)
    tb = max(16, min(batch_tile, half))
    Bp = _round_up(B, tb)
    return tb, Bp


def actor_net_forward(x, packed, *, batch_tile=1024):
    w1p, b1p, w2p, b2p, whp, bhp = packed["tensors"]
    A = packed["action_dim"]

    S = x.shape[1]
    H1P = w1p.shape[1]
    H2P = w2p.shape[1]
    HEADP = whp.shape[1]

    B = x.shape[0]
    tb, Bp = _choose_tile(B, batch_tile)
    xp = jnp.pad(x, ((0, Bp - B), (0, 0))).astype(jnp.bfloat16)

    kernel = functools.partial(actor_kernel, action_dim=A)

    out = pl.pallas_call(
        kernel,
        out_shape=jax.ShapeDtypeStruct((Bp, HEADP), jnp.bfloat16),
        grid=(Bp // tb,),
        in_specs=[
            pl.BlockSpec((tb, S), lambda i: (i, 0)),        # x: batch-tiled
            pl.BlockSpec((S, H1P), lambda i: (0, 0)),       # weights resident
            pl.BlockSpec((1, H1P), lambda i: (0, 0)),
            pl.BlockSpec((H1P, H2P), lambda i: (0, 0)),
            pl.BlockSpec((1, H2P), lambda i: (0, 0)),
            pl.BlockSpec((H2P, HEADP), lambda i: (0, 0)),
            pl.BlockSpec((1, HEADP), lambda i: (0, 0)),
        ],
        out_specs=pl.BlockSpec((tb, HEADP), lambda i: (i, 0)),
        compiler_params=pltpu.CompilerParams(
            dimension_semantics=("parallel",),
            vmem_limit_bytes=32 << 20,
        ),
    )(xp, w1p, b1p, w2p, b2p, whp, bhp)

    out = out.astype(jnp.float32)
    mu = out[:B, :A]
    std = out[:B, A:2 * A]
    return mu, std


# --------------------------------------------------------------------------
# Init mirroring the PyTorch module (weights stored as (in, out))
# --------------------------------------------------------------------------
def init_params(key, state_dim, action_dim):
    ks = jax.random.split(key, 8)

    def linear_default(kw, kb, fan_in, fan_out):
        bound = 1.0 / jnp.sqrt(float(fan_in))
        w = jax.random.uniform(kw, (fan_in, fan_out), jnp.float32, -bound, bound)
        b = jax.random.uniform(kb, (1, fan_out), jnp.float32, -bound, bound)
        return w, b

    w1, b1 = linear_default(ks[0], ks[1], state_dim, HIDDEN1_UNITS)
    w2, b2 = linear_default(ks[2], ks[3], HIDDEN1_UNITS, HIDDEN2_UNITS)

    bound_h2 = 1.0 / jnp.sqrt(float(HIDDEN2_UNITS))
    wmu = 0.0001 * jax.random.normal(ks[4], (HIDDEN2_UNITS, action_dim), jnp.float32)
    bmu = jax.random.uniform(ks[5], (1, action_dim), jnp.float32, -bound_h2, bound_h2)
    wls = 0.0001 * jax.random.normal(ks[6], (HIDDEN2_UNITS, action_dim), jnp.float32)
    bls = jax.random.uniform(ks[7], (1, action_dim), jnp.float32, -bound_h2, bound_h2)

    return (w1, b1, w2, b2, wmu, bmu, wls, bls)


def reference_forward(x, params):
    (w1, b1, w2, b2, wmu, bmu, wls, bls) = params
    h1 = jnp.maximum(x @ w1 + b1, 0.0)
    h2 = jnp.maximum(h1 @ w2 + b2, 0.0)
    mu = jnp.tanh(h2 @ wmu + bmu)
    log_std = jnp.logaddexp(h2 @ wls + bls, 0.0)   # softplus
    return mu, jnp.exp(log_std)


if __name__ == "__main__":
    key = jax.random.PRNGKey(0)
    kx, kp = jax.random.split(key)

    batch, state_dim, action_dim = 2, 8, 4
    x = jax.random.normal(kx, (batch, state_dim), jnp.float32)
    params = init_params(kp, state_dim, action_dim)

    # Pack / pad / cast weights ONCE, outside the per-call hot path.
    packed = pack_params(params)

    mu, std = actor_net_forward(x, packed)
    mu = jax.block_until_ready(mu)
    std = jax.block_until_ready(std)

    mu_ref, std_ref = reference_forward(x, params)
    assert mu.shape == (batch, action_dim) and std.shape == (batch, action_dim)
    # bf16 matmuls / bf16 output slab with f32 accumulation -> loosened tolerance
    assert jnp.allclose(mu, mu_ref, atol=2e-2, rtol=2e-2)
    assert jnp.allclose(std, std_ref, atol=2e-2, rtol=2e-2)

    print("KERNEL_OK")
</pallas_src>

<mosaic_0001>
module attributes {stable_mosaic.version = 11 : i64} {
  func.func @actor_kernel(%arg0: i32, %arg1: memref<16x8xbf16, #tpu.memory_space<vmem>>, %arg2: memref<8x384xbf16, #tpu.memory_space<vmem>>, %arg3: memref<1x384xf32, #tpu.memory_space<vmem>>, %arg4: memref<384x640xbf16, #tpu.memory_space<vmem>>, %arg5: memref<1x640xf32, #tpu.memory_space<vmem>>, %arg6: memref<640x128xbf16, #tpu.memory_space<vmem>>, %arg7: memref<1x128xf32, #tpu.memory_space<vmem>>, %arg8: memref<16x128xbf16, #tpu.memory_space<vmem>>) attributes {dimension_semantics = [#tpu.dimension_semantics<parallel>], iteration_bounds = array<i64: 1>, scalar_prefetch = 0 : i64, scratch_operands = 0 : i64, tpu.core_type = #tpu.core_type<tc>, window_params = [{transform_indices = @transform_0, window_bounds = array<i64: 16, 8>}, {pipeline_mode = #tpu.pipeline_mode<synchronous>, transform_indices = @transform_1, window_bounds = array<i64: 8, 384>}, {pipeline_mode = #tpu.pipeline_mode<synchronous>, transform_indices = @transform_2, window_bounds = array<i64: 1, 384>}, {pipeline_mode = #tpu.pipeline_mode<synchronous>, transform_indices = @transform_3, window_bounds = array<i64: 384, 640>}, {pipeline_mode = #tpu.pipeline_mode<synchronous>, transform_indices = @transform_4, window_bounds = array<i64: 1, 640>}, {pipeline_mode = #tpu.pipeline_mode<synchronous>, transform_indices = @transform_5, window_bounds = array<i64: 640, 128>}, {pipeline_mode = #tpu.pipeline_mode<synchronous>, transform_indices = @transform_6, window_bounds = array<i64: 1, 128>}, {transform_indices = @transform_7, window_bounds = array<i64: 16, 128>}]} {
    %c0 = arith.constant 0 : index
    %c0_0 = arith.constant 0 : index
    %0 = vector.load %arg1[%c0, %c0_0] : memref<16x8xbf16, #tpu.memory_space<vmem>>, vector<16x8xbf16>
    %c0_1 = arith.constant 0 : index
    %c0_2 = arith.constant 0 : index
    %1 = vector.load %arg2[%c0_1, %c0_2] : memref<8x384xbf16, #tpu.memory_space<vmem>>, vector<8x384xbf16>
    %cst = arith.constant dense<0.000000e+00> : vector<16x384xf32>
    %2 = tpu.matmul %0, %1, %cst {dimension_numbers = #tpu.dot_dimension_numbers<[1], [0], [0], [1], [0, 0, 1, 1], [], []>} : vector<16x8xbf16>, vector<8x384xbf16>, vector<16x384xf32> -> vector<16x384xf32>
    %c0_3 = arith.constant 0 : index
    %c0_4 = arith.constant 0 : index
    %3 = vector.load %arg3[%c0_3, %c0_4] : memref<1x384xf32, #tpu.memory_space<vmem>>, vector<1x384xf32>
    %4 = vector.broadcast %3 : vector<1x384xf32> to vector<16x384xf32>
    %5 = arith.addf %2, %4 : vector<16x384xf32>
    %cst_5 = arith.constant 0.000000e+00 : f32
    %6 = vector.broadcast %cst_5 : f32 to vector<16x384xf32>
    %7 = arith.maximumf %5, %6 : vector<16x384xf32>
    %8 = arith.truncf %7 : vector<16x384xf32> to vector<16x384xbf16>
    %c0_6 = arith.constant 0 : index
    %c0_7 = arith.constant 0 : index
    %9 = vector.load %arg4[%c0_6, %c0_7] : memref<384x640xbf16, #tpu.memory_space<vmem>>, vector<384x640xbf16>
    %cst_8 = arith.constant dense<0.000000e+00> : vector<16x640xf32>
    %10 = tpu.matmul %8, %9, %cst_8 {dimension_numbers = #tpu.dot_dimension_numbers<[1], [0], [0], [1], [0, 0, 1, 1], [], []>} : vector<16x384xbf16>, vector<384x640xbf16>, vector<16x640xf32> -> vector<16x640xf32>
    %c0_9 = arith.constant 0 : index
    %c0_10 = arith.constant 0 : index
    %11 = vector.load %arg5[%c0_9, %c0_10] : memref<1x640xf32, #tpu.memory_space<vmem>>, vector<1x640xf32>
    %12 = vector.broadcast %11 : vector<1x640xf32> to vector<16x640xf32>
    %13 = arith.addf %10, %12 : vector<16x640xf32>
    %cst_11 = arith.constant 0.000000e+00 : f32
    %14 = vector.broadcast %cst_11 : f32 to vector<16x640xf32>
    %15 = arith.maximumf %13, %14 : vector<16x640xf32>
    %16 = arith.truncf %15 : vector<16x640xf32> to vector<16x640xbf16>
    %c0_12 = arith.constant 0 : index
    %c0_13 = arith.constant 0 : index
    %17 = vector.load %arg6[%c0_12, %c0_13] : memref<640x128xbf16, #tpu.memory_space<vmem>>, vector<640x128xbf16>
    %cst_14 = arith.constant dense<0.000000e+00> : vector<16x128xf32>
    %18 = tpu.matmul %16, %17, %cst_14 {dimension_numbers = #tpu.dot_dimension_numbers<[1], [0], [0], [1], [0, 0, 1, 1], [], []>} : vector<16x640xbf16>, vector<640x128xbf16>, vector<16x128xf32> -> vector<16x128xf32>
    %c0_15 = arith.constant 0 : index
    %c0_16 = arith.constant 0 : index
    %19 = vector.load %arg7[%c0_15, %c0_16] : memref<1x128xf32, #tpu.memory_space<vmem>>, vector<1x128xf32>
    %20 = vector.broadcast %19 : vector<1x128xf32> to vector<16x128xf32>
    %21 = arith.addf %18, %20 : vector<16x128xf32>
    %22 = tpu.iota {dimensions = array<i32: 1>} : vector<16x128xi32>
    %c4_i32 = arith.constant 4 : i32
    %23 = vector.broadcast %c4_i32 : i32 to vector<16x128xi32>
    %24 = arith.cmpi slt, %22, %23 : vector<16x128xi32>
    %cst_17 = arith.constant 2.000000e+00 : f32
    %25 = vector.broadcast %cst_17 : f32 to vector<16x128xf32>
    %26 = arith.mulf %25, %21 : vector<16x128xf32>
    %cst_18 = arith.constant -4.000000e+01 : f32
    %cst_19 = arith.constant 4.000000e+01 : f32
    %27 = vector.broadcast %cst_18 : f32 to vector<16x128xf32>
    %28 = arith.maximumf %27, %26 : vector<16x128xf32>
    %29 = vector.broadcast %cst_19 : f32 to vector<16x128xf32>
    %30 = arith.minimumf %29, %28 : vector<16x128xf32>
    %31 = arith.select %24, %30, %21 : vector<16x128xi1>, vector<16x128xf32>
    %32 = math.exp %31 : vector<16x128xf32>
    %cst_20 = arith.constant 1.000000e+00 : f32
    %33 = vector.broadcast %cst_20 : f32 to vector<16x128xf32>
    %34 = arith.subf %32, %33 : vector<16x128xf32>
    %cst_21 = arith.constant 1.000000e+00 : f32
    %35 = vector.broadcast %cst_21 : f32 to vector<16x128xf32>
    %36 = arith.addf %32, %35 : vector<16x128xf32>
    %37 = tpu.reciprocal %36 {approx = true} : vector<16x128xf32> -> vector<16x128xf32>
    %38 = arith.mulf %34, %37 : vector<16x128xf32>
    %cst_22 = arith.constant 1.000000e+00 : f32
    %39 = vector.broadcast %cst_22 : f32 to vector<16x128xf32>
    %40 = arith.addf %39, %32 : vector<16x128xf32>
    %41 = arith.select %24, %38, %40 : vector<16x128xi1>, vector<16x128xf32>
    %42 = arith.truncf %41 : vector<16x128xf32> to vector<16x128xbf16>
    %c0_23 = arith.constant 0 : index
    %c0_24 = arith.constant 0 : index
    %43 = vector.load %arg8[%c0_23, %c0_24] : memref<16x128xbf16, #tpu.memory_space<vmem>>, vector<16x128xbf16>
    tpu.vector_store %arg8[%c0_23, %c0_24], %42 {strides = array<i32>} : memref<16x128xbf16, #tpu.memory_space<vmem>>, vector<16x128xbf16>,
    return
  }
  func.func @transform_0(%arg0: i32) -> (i32, i32) {
    %c0_i32 = arith.constant 0 : i32
    %c0_i32_0 = arith.constant 0 : i32
    return %arg0, %c0_i32 : i32, i32
  }
  func.func @transform_1(%arg0: i32) -> (i32, i32) {
    %c0_i32 = arith.constant 0 : i32
    %c0_i32_0 = arith.constant 0 : i32
    %c0_i32_1 = arith.constant 0 : i32
    return %c0_i32, %c0_i32_0 : i32, i32
  }
  func.func @transform_2(%arg0: i32) -> (i32, i32) {
    %c0_i32 = arith.constant 0 : i32
    %c0_i32_0 = arith.constant 0 : i32
    %c0_i32_1 = arith.constant 0 : i32
    return %c0_i32, %c0_i32_0 : i32, i32
  }
  func.func @transform_3(%arg0: i32) -> (i32, i32) {
    %c0_i32 = arith.constant 0 : i32
    %c0_i32_0 = arith.constant 0 : i32
    %c0_i32_1 = arith.constant 0 : i32
    return %c0_i32, %c0_i32_0 : i32, i32
  }
  func.func @transform_4(%arg0: i32) -> (i32, i32) {
    %c0_i32 = arith.constant 0 : i32
    %c0_i32_0 = arith.constant 0 : i32
    %c0_i32_1 = arith.constant 0 : i32
    return %c0_i32, %c0_i32_0 : i32, i32
  }
  func.func @transform_5(%arg0: i32) -> (i32, i32) {
    %c0_i32 = arith.constant 0 : i32
    %c0_i32_0 = arith.constant 0 : i32
    %c0_i32_1 = arith.constant 0 : i32
    return %c0_i32, %c0_i32_0 : i32, i32
  }
  func.func @transform_6(%arg0: i32) -> (i32, i32) {
    %c0_i32 = arith.constant 0 : i32
    %c0_i32_0 = arith.constant 0 : i32
    %c0_i32_1 = arith.constant 0 : i32
    return %c0_i32, %c0_i32_0 : i32, i32
  }
  func.func @transform_7(%arg0: i32) -> (i32, i32) {
    %c0_i32 = arith.constant 0 : i32
    %c0_i32_0 = arith.constant 0 : i32
    return %arg0, %c0_i32 : i32, i32
  }
}

</mosaic_0001>

<bundles_post_ra>
// kernel: tpu_custom_call.1
= control target key start
LH: loop header
LB: loop body
LE: loop exit
PB: predicated region body
PF: predicated region fallthrough
CT: control target
= control target key end

     0   :  { %12 = vsyncpa [#allocation3], 0  ;;  %s2617_s0 = inlined_call_operand.vmem [shape: bf16[16,8], index: 0, kind: input, shape index: {}]   ;;  %s2618_s1 = inlined_call_operand.vmem [shape: bf16[8,384], index: 1, kind: input, shape index: {}]   ;;  %s2619_s2 = inlined_call_operand.hbm [shape: f32[1,384], index: 2, kind: input, shape index: {}]   ;;  %s2620_s3 = inlined_call_operand.hbm [shape: bf16[384,640], index: 3, kind: input, shape index: {}]   ;;  %s2621_s4 = inlined_call_operand.vmem [shape: f32[1,640], index: 4, kind: input, shape index: {}]   ;;  %s2622_s5 = inlined_call_operand.hbm [shape: bf16[640,128], index: 5, kind: input, shape index: {}]   ;;  %s2623_s6 = inlined_call_operand.vmem [shape: f32[1,128], index: 6, kind: input, shape index: {}]   ;;  %s2624_s7 = inlined_call_operand.hbm [shape: bf16[16,128], index: 7, kind: output, shape index: {}]  }
   0x1   :  { %13 = vsyncpa [#allocation6], 0 }
   0x2   :  { %14 = vsyncpa [#allocation4], 0  ;;  %s2429_s24 = smov [#allocation5]   ;;  %s2335_s28 = scalar_lea.hbm %s2620_s3, 15360 }
   0x3   :  { %s34_s25 = sshll.u32 %s2429_s24, 4  ;;  %p2336_p0 = scmp.ne.s32.totalorder %s2620_s3, %s2335_s28  ;;  %s35_s25 = int_to_ptr.vmem [resolvable:$true] %s34_s25 }
   0x4   :  { %p2339_p1 = scmp.lt.u32.totalorder %s2335_s28, %s2620_s3 }
   0x6   :  { %p2341_p2 = pnand %p2339_p1, %p2336_p0 }
   0x8   :  { %2344 = shalt.err (!%p2341_p2)
}
   0x9   :  { %s2345_s10 = scalar_lea.vmem %s35_s25, 15360  ;;  %p2350_p4 = scmp.lt.s32.totalorder %s35_s25, %s35_s25 }
   0xa   :  { %p2346_p3 = scmp.ne.s32.totalorder %s35_s25, %s2345_s10  ;;  %p2351_p5 = scmp.lt.s32.totalorder %s2345_s10, %s2345_s10 }
   0xc   :  { %p2352_p6 = por %p2351_p5, %p2350_p4 }
   0xe   :  { %p2353_p7 = pnand %p2352_p6, %p2346_p3 }
  0x10   :  { %2356 = shalt.err (!%p2353_p7)
}
  0x11   :  { %s2430_s11 = smov 320   ;;  %s2431_s12 = smov 20  }
  0x12   :  { %40 = dma.hbm_to_vmem [thread:$0]  %s2620_s3, 15360, %s35_s25, [#allocation6], %s2430_s11, %s2430_s11, %s2431_s12  }
  0x13   :  { %s2432_s15 = smov [#allocation2]   ;;  %s2433_s17 = smov [#allocation7]  }
  0x14   :  { %s25_s16 = sshll.u32 %s2432_s15, 4  ;;  %s48_s18 = sshll.u32 %s2433_s17, 4  ;;  %s26_s16 = int_to_ptr.vmem [resolvable:$true] %s25_s16  ;;  %s49_s18 = int_to_ptr.vmem [resolvable:$true] %s48_s18 }
  0x15   :  { %s2357_s21 = scalar_lea.hbm %s2619_s2, 48 }
  0x16   :  { %p2358_p8 = scmp.ne.s32.totalorder %s2619_s2, %s2357_s21  ;;  %p2361_p9 = scmp.lt.u32.totalorder %s2357_s21, %s2619_s2 }
  0x18   :  { %p2363_p10 = pnand %p2361_p9, %p2358_p8 }
  0x1a   :  { %2366 = shalt.err (!%p2363_p10)
}
  0x1b   :  { %s2367_s3 = scalar_lea.vmem %s26_s16, 48  ;;  %s2371_s25 = scalar_lea.vmem %s26_s16, 64 }
  0x1c   :  { %p2368_p11 = scmp.ne.s32.totalorder %s26_s16, %s2367_s3  ;;  %p2372_p12 = scmp.lt.s32.totalorder %s26_s16, %s26_s16 }
  0x1d   :  { %p2373_p13 = scmp.lt.s32.totalorder %s2371_s25, %s2367_s3 }
  0x1f   :  { %p2374_p0 = por %p2373_p13, %p2372_p12 }
  0x21   :  { %p2375_p1 = pnand %p2374_p0, %p2368_p11 }
  0x23   :  { %2378 = shalt.err (!%p2375_p1)
}
  0x24   :  { %28 = dma.hbm_to_vmem [thread:$0]  %s2619_s2, 48, %s26_s16, [#allocation3]  }
  0x25   :  { %s2379_s8 = scalar_lea.hbm %s2622_s5, 5120 }
  0x26   :  { %p2380_p2 = scmp.ne.s32.totalorder %s2622_s5, %s2379_s8  ;;  %p2383_p3 = scmp.lt.u32.totalorder %s2379_s8, %s2622_s5 }
  0x28   :  { %p2385_p4 = pnand %p2383_p3, %p2380_p2 }
  0x2a   :  { %2388 = shalt.err (!%p2385_p4)
}
  0x2b   :  { %s2389_s13 = scalar_lea.vmem %s49_s18, 5120  ;;  %p2394_p6 = scmp.lt.s32.totalorder %s49_s18, %s49_s18 }
  0x2c   :  { %p2390_p5 = scmp.ne.s32.totalorder %s49_s18, %s2389_s13  ;;  %p2395_p7 = scmp.lt.s32.totalorder %s2389_s13, %s2389_s13 }
  0x2e   :  { %p2396_p8 = por %p2395_p7, %p2394_p6 }
  0x30   :  { %p2397_p9 = pnand %p2396_p8, %p2390_p5 }
  0x32   :  { %2400 = shalt.err (!%p2397_p9)
}
  0x33   :  { %s2434_s2 = smov 64   ;;  %s2435_s14 = smov 4  }
  0x34   :  { %54 = dma.hbm_to_vmem [thread:$0]  %s2622_s5, 5120, %s49_s18, [#allocation6], %s2434_s2, %s2434_s2, %s2435_s14  }
  0x35   :  { %2423 = dma.done.wait [#allocation3], 48  }
  0x36   :  { %2424 = vsyncadd [#allocation3], 4294967248 }
  0x37   :  { %2425 = dma.done.wait [#allocation6], 20480  }
  0x38   :  { %2426 = vsyncadd [#allocation6], 4294946816  ;;  %v2436_v0 = vmov 0   ;;  %v69_v1 = vld [vmem:[%s2618_s1] sm:$0xff]  ;;  %vm105_vm0 = vcmask 1043456   ;;  %vm101_vm1 = vcmask 64512  }
  0x39   :  { %147 = vmatprep.mubr.bf16.mxu1 %v2436_v0  ;;  %v1777_v2 = vcombine.high %v69_v1, %v69_v1  ;;  %v1776_v3 = vcombine.low %v69_v1, %v69_v1  ;;  %v2118_v4 = vld [vmem:[%s2618_s1 + $0x8] ss:$0 sps:$4 sm:$0xff]   ;;  %v2119_v5 = vld [vmem:[#allocation5 + $0x4] ss:$20 sps:$4 sm:$0xff]   ;;  %v2124_v9 = vld [vmem:[#allocation5] ss:$20 sps:$4 sm:$0xff]  }
  0x3a   :  { %v2117_v7 = vld [vmem:[%s2617_s0] sm:$0xff]   ;;  %1003 = vmatprep.subr.bf16.mxu0 %v2119_v5  ;;  %v2123_v8 = vld [vmem:[#allocation5 + $0xc] ss:$20 sps:$4 sm:$0xff]   ;;  %v2437_v10 = vmov 0.0   ;;  %v113_v11 = vsel %vm105_vm0, %v2118_v4, 0  ;;  %vm2438_vm2 = vmmov 0  }
  0x3b   :  { %1779 = vmatprep.subr.msk.bf16.mxu1 %vm105_vm0, %v1777_v2  ;;  %v107_v6 = vsel %vm105_vm0, %v1776_v3, 0  ;;  %v2125_v12 = vld [vmem:[#allocation5 + $0x2c] ss:$20 sps:$4 sm:$0xff]   ;;  %1004 = vmatpush1.bf16.msra.mxu0 %v2124_v9  ;;  %v2130_v13 = vld [vmem:[#allocation5 + $0x28] ss:$20 sps:$4 sm:$0xff]  }
  0x3c   :  { %116 = vmatpush1.bf16.msra.mxu1 %v107_v6  ;;  %1005 = vmatprep.subr.bf16.mxu0 %v2125_v12  ;;  %v2131_v14 = vld [vmem:[#allocation5 + $0x54] ss:$20 sps:$4 sm:$0xff]   ;;  %v2136_v15 = vld [vmem:[#allocation5 + $0x50] ss:$20 sps:$4 sm:$0xff]   ;;  %v2142_v19 = vld [vmem:[#allocation5 + $0x78] ss:$20 sps:$4 sm:$0xff]  }
  0x3d   :  { %2042 = vmatprep.subr.bf16.mxu1 %v2437_v10  ;;  %v2137_v16 = vld [vmem:[#allocation5 + $0x7c] ss:$20 sps:$4 sm:$0xff]   ;;  %v2129_v18 = vld [vmem:[#allocation5 + $0x34] ss:$20 sps:$4 sm:$0xff]   ;;  %v2143_v20 = vld [vmem:[#allocation5 + $0xa4] ss:$20 sps:$4 sm:$0xff]  }
  0x3e   :  { %v2121_v17 = vld [vmem:[#allocation5 + $0x8] ss:$20 sps:$4 sm:$0xff]   ;;  %v2127_v21 = vld [vmem:[#allocation5 + $0x30] ss:$20 sps:$4 sm:$0xff]   ;;  %v2148_v23 = vld [vmem:[#allocation5 + $0xa0] ss:$20 sps:$4 sm:$0xff]  }
  0x3f   :  { %1780 = vmatmul.mubr.msk.bf16.vlgmr.msra.gmra.mrb[0].mxu1 %vm101_vm1, %v2117_v7  ;;  %1006 = vmatpush1.bf16.msra.mxu0 %v2130_v13  ;;  %v2135_v22 = vld [vmem:[#allocation5 + $0x5c] ss:$20 sps:$4 sm:$0xff]   ;;  %v2149_v24 = vld [vmem:[#allocation5 + $0xcc] ss:$20 sps:$4 sm:$0xff]   ;;  %v2141_v26 = vld [vmem:[#allocation5 + $0x84] ss:$20 sps:$4 sm:$0xff]   ;;  %v73_v13 = vlaneseq }
  0x40   :  { %2043 = vmatpush3.bf16.msra.mxu1 %v113_v11  ;;  %2044 = vmatprep.mubr.msk.bf16.mxu1 %vm2438_vm2, %v2437_v10  ;;  %v2133_v25 = vld [vmem:[#allocation5 + $0x58] ss:$20 sps:$4 sm:$0xff]   ;;  %v2154_v27 = vld [vmem:[#allocation5 + $0xc8] ss:$20 sps:$4 sm:$0xff]   ;;  %v2139_v29 = vld [vmem:[#allocation5 + $0x80] ss:$20 sps:$4 sm:$0xff]  }
  0x41   :  { %1089 = vmatprep.subr.bf16.mxu1 %v2123_v8  ;;  %1007 = vmatprep.subr.bf16.mxu0 %v2131_v14  ;;  %v2155_v28 = vld [vmem:[#allocation5 + $0xf4] ss:$20 sps:$4 sm:$0xff]   ;;  %v2147_v30 = vld [vmem:[#allocation5 + $0xac] ss:$20 sps:$4 sm:$0xff]   ;;  %v2160_v31 = vld [vmem:[#allocation5 + $0xf0] ss:$20 sps:$4 sm:$0xff]  }
  0x42   :  { %v2161_v32 = vld [vmem:[#allocation5 + $0x11c] ss:$20 sps:$4 sm:$0xff]   ;;  %v2153_v34 = vld [vmem:[#allocation5 + $0xd4] ss:$20 sps:$4 sm:$0xff]   ;;  %v2166_v35 = vld [vmem:[#allocation5 + $0x118] ss:$20 sps:$4 sm:$0xff]  }
  0x43   :  { %1008 = vmatpush1.bf16.msra.mxu0 %v2136_v15  ;;  %v2145_v33 = vld [vmem:[#allocation5 + $0xa8] ss:$20 sps:$4 sm:$0xff]   ;;  %v2167_v36 = vld [vmem:[#allocation5 + $0x144] ss:$20 sps:$4 sm:$0xff]   ;;  %v2172_v39 = vld [vmem:[#allocation5 + $0x140] ss:$20 sps:$4 sm:$0xff]  }
  0x44   :  { %1009 = vmatprep.subr.bf16.mxu0 %v2137_v16  ;;  %v2151_v37 = vld [vmem:[#allocation5 + $0xd0] ss:$20 sps:$4 sm:$0xff]   ;;  %v2173_v40 = vld [vmem:[#allocation5 + $0x16c] ss:$20 sps:$4 sm:$0xff]   ;;  %v2178_v44 = vld [vmem:[#allocation5 + $0x168] ss:$20 sps:$4 sm:$0xff]  }
  0x45   :  { %v2159_v38 = vld [vmem:[#allocation5 + $0xfc] ss:$20 sps:$4 sm:$0xff]   ;;  %v2157_v41 = vld [vmem:[#allocation5 + $0xf8] ss:$20 sps:$4 sm:$0xff]   ;;  %v2163_v43 = vld [vmem:[#allocation5 + $0x120] ss:$20 sps:$4 sm:$0xff]  }
  0x46   :  { %v2165_v42 = vld [vmem:[#allocation5 + $0x124] ss:$20 sps:$4 sm:$0xff]   ;;  %v2171_v45 = vld [vmem:[#allocation5 + $0x14c] ss:$20 sps:$4 sm:$0xff]   ;;  %v2179_v46 = vld [vmem:[#allocation5 + $0x194] ss:$20 sps:$4 sm:$0xff]  }
  0x47   :  { %2045 = vmatmul.mubr.msk.bf16.vlgmr.msra.gmra.mrb[4].mxu1 %vm101_vm1, %v2117_v7  ;;  %1010 = vmatpush1.bf16.msra.mxu0 %v2142_v19  ;;  %v2184_v47 = vld [vmem:[#allocation5 + $0x190] ss:$20 sps:$4 sm:$0xff]   ;;  %v2169_v49 = vld [vmem:[#allocation5 + $0x148] ss:$20 sps:$4 sm:$0xff]   ;;  %v2190_v51 = vld [vmem:[#allocation5 + $0x1b8] ss:$20 sps:$4 sm:$0xff]  }
  0x48   :  { %1090 = vmatpush1.bf16.msra.mxu1 %v2121_v17  ;;  %1011 = vmatprep.subr.bf16.mxu0 %v2143_v20  ;;  %v2185_v48 = vld [vmem:[#allocation5 + $0x1bc] ss:$20 sps:$4 sm:$0xff]   ;;  %v2177_v50 = vld [vmem:[#allocation5 + $0x174] ss:$20 sps:$4 sm:$0xff]   ;;  %v2191_v52 = vld [vmem:[#allocation5 + $0x1e4] ss:$20 sps:$4 sm:$0xff]  }
  0x49   :  { %1091 = vmatprep.subr.bf16.mxu1 %v2129_v18  ;;  %v2175_v53 = vld [vmem:[#allocation5 + $0x170] ss:$20 sps:$4 sm:$0xff]   ;;  %v2196_v55 = vld [vmem:[#allocation5 + $0x1e0] ss:$20 sps:$4 sm:$0xff]   ;;  %v2181_v57 = vld [vmem:[#allocation5 + $0x198] ss:$20 sps:$4 sm:$0xff]  }
  0x4a   :  { %v2183_v54 = vld [vmem:[#allocation5 + $0x19c] ss:$20 sps:$4 sm:$0xff]   ;;  %v2197_v56 = vld [vmem:[#allocation5 + $0x20c] ss:$20 sps:$4 sm:$0xff]   ;;  %v2189_v58 = vld [vmem:[#allocation5 + $0x1c4] ss:$20 sps:$4 sm:$0xff]  }
  0x4b   :  { %1012 = vmatpush1.bf16.msra.mxu0 %v2148_v23  ;;  %v2202_v59 = vld [vmem:[#allocation5 + $0x208] ss:$20 sps:$4 sm:$0xff]   ;;  %v2187_v60 = vld [vmem:[#allocation5 + $0x1c0] ss:$20 sps:$4 sm:$0xff]   ;;  %v2199_v1 = vld [vmem:[#allocation5 + $0x210] ss:$20 sps:$4 sm:$0xff]  }
  0x4c   :  { %1092 = vmatpush1.bf16.msra.mxu1 %v2127_v21  ;;  %1013 = vmatprep.subr.bf16.mxu0 %v2149_v24  ;;  %v2195_v61 = vld [vmem:[#allocation5 + $0x1ec] ss:$20 sps:$4 sm:$0xff]   ;;  %v2193_v62 = vld [vmem:[#allocation5 + $0x1e8] ss:$20 sps:$4 sm:$0xff]   ;;  %v2208_v5 = vld [vmem:[#allocation5 + $0x230] ss:$20 sps:$4 sm:$0xff]  }
  0x4d   :  { %1093 = vmatprep.subr.bf16.mxu1 %v2135_v22  ;;  %v2201_v63 = vld [vmem:[#allocation5 + $0x214] ss:$20 sps:$4 sm:$0xff]   ;;  %v2207_v3 = vld [vmem:[#allocation5 + $0x23c] ss:$20 sps:$4 sm:$0xff]   ;;  %v2205_v4 = vld [vmem:[#allocation5 + $0x238] ss:$20 sps:$4 sm:$0xff]  }
  0x4e   :  { %v2203_v2 = vld [vmem:[#allocation5 + $0x234] ss:$20 sps:$4 sm:$0xff]   ;;  %v2209_v6 = vld [vmem:[#allocation5 + $0x25c] ss:$20 sps:$4 sm:$0xff]   ;;  %v2213_v7 = vld [vmem:[#allocation5 + $0x264] ss:$20 sps:$4 sm:$0xff]  }
  0x4f   :  { %1014 = vmatpush1.bf16.msra.mxu0 %v2154_v27  ;;  %v2211_v8 = vld [vmem:[#allocation5 + $0x260] ss:$20 sps:$4 sm:$0xff]   ;;  %v2214_v9 = vld [vmem:[#allocation5 + $0x258] ss:$20 sps:$4 sm:$0xff]   ;;  %v2535_v14 = vshrl.u32 %v73_v13, 7 }
  0x50   :  { %1094 = vmatpush1.bf16.msra.mxu1 %v2133_v25  ;;  %1015 = vmatprep.subr.bf16.mxu0 %v2155_v28  ;;  %v2217_v11 = vld [vmem:[#allocation5 + $0x284] ss:$20 sps:$4 sm:$0xff]   ;;  %v2220_v12 = vld [vmem:[#allocation5 + $0x28c] ss:$20 sps:$4 sm:$0xff]   ;;  %v71_v16 = vld [vmem:[#allocation2] sm:$0x7] }
  0x51   :  { %1095 = vmatprep.subr.bf16.mxu1 %v2141_v26  ;;  %v75_v15 = vsub.s32 0, %v2535_v14  ;;  %v79_v17 = vsub.s32 1, %v2535_v14  ;;  %v83_v23 = vsub.s32 2, %v2535_v14 }
  0x53   :  { %1016 = vmatpush1.bf16.msra.mxu0 %v2160_v31  ;;  %v76_v18 = vrot.slane %v71_v16, %v75_v15  ;;  %v80_v19 = vrot.slane %v71_v16, %v79_v17  ;;  %v84_v31 = vrot.slane %v71_v16, %v83_v23  ;;  %v2264_v16 = vld [vmem:[#allocation5 + $0x10] ss:$20 sps:$4 sm:$0xff]  }
  0x54   :  { %1096 = vmatpush1.bf16.msra.mxu1 %v2139_v29  ;;  %1017 = vmatprep.subr.bf16.mxu0 %v2161_v32 }
  0x55   :  { %1097 = vmatprep.subr.bf16.mxu1 %v2147_v30 }
  0x57   :  { %1018 = vmatpush1.bf16.msra.mxu0 %v2166_v35 }
  0x58   :  { %1098 = vmatpush1.bf16.msra.mxu1 %v2145_v33  ;;  %1019 = vmatprep.subr.bf16.mxu0 %v2167_v36  ;;  %v2215_v36 = vld [vmem:[#allocation5 + $0x280] ss:$20 sps:$4 sm:$0xff]  }
  0x59   :  { %1099 = vmatprep.subr.bf16.mxu1 %v2153_v34 }
  0x5b   :  { %1020 = vmatpush1.bf16.msra.mxu0 %v2172_v39  ;;  %v2223_v39 = vld [vmem:[#allocation5 + $0x2ac] ss:$20 sps:$4 sm:$0xff]  }
  0x5c   :  { %1100 = vmatpush1.bf16.msra.mxu1 %v2151_v37  ;;  %1021 = vmatprep.subr.bf16.mxu0 %v2173_v40  ;;  %v2218_v37 = vld [vmem:[#allocation5 + $0x288] ss:$20 sps:$4 sm:$0xff]  }
  0x5d   :  { %1101 = vmatprep.subr.bf16.mxu1 %v2159_v38  ;;  %v2226_v40 = vld [vmem:[#allocation5 + $0x2b4] ss:$20 sps:$4 sm:$0xff]  }
  0x5f   :  { %1022 = vmatpush1.bf16.msra.mxu0 %v2178_v44 }
  0x60   :  { %1102 = vmatpush1.bf16.msra.mxu1 %v2157_v41  ;;  %1023 = vmatprep.subr.bf16.mxu0 %v2179_v46 }
  0x61   :  { %1103 = vmatprep.subr.bf16.mxu1 %v2165_v42 }
  0x63   :  { %1024 = vmatpush1.bf16.msra.mxu0 %v2184_v47  ;;  %v2221_v47 = vld [vmem:[#allocation5 + $0x2a8] ss:$20 sps:$4 sm:$0xff]  }
  0x64   :  { %1104 = vmatpush1.bf16.msra.mxu1 %v2163_v43  ;;  %1025 = vmatprep.subr.bf16.mxu0 %v2185_v48  ;;  %v2224_v48 = vld [vmem:[#allocation5 + $0x2b0] ss:$20 sps:$4 sm:$0xff]  }
  0x65   :  { %1105 = vmatprep.subr.bf16.mxu1 %v2171_v45 }
  0x67   :  { %1026 = vmatpush1.bf16.msra.mxu0 %v2190_v51 }
  0x68   :  { %1106 = vmatpush1.bf16.msra.mxu1 %v2169_v49  ;;  %1027 = vmatprep.subr.bf16.mxu0 %v2191_v52  ;;  %v2229_v49 = vld [vmem:[#allocation5 + $0x2d4] ss:$20 sps:$4 sm:$0xff]  }
  0x69   :  { %1107 = vmatprep.subr.bf16.mxu1 %v2177_v50  ;;  %v2232_v50 = vld [vmem:[#allocation5 + $0x2dc] ss:$20 sps:$4 sm:$0xff]  }
  0x6b   :  { %1028 = vmatpush1.bf16.msra.mxu0 %v2196_v55  ;;  %v2235_v55 = vld [vmem:[#allocation5 + $0x2fc] ss:$20 sps:$4 sm:$0xff]  }
  0x6c   :  { %1108 = vmatpush1.bf16.msra.mxu1 %v2175_v53  ;;  %1029 = vmatprep.subr.bf16.mxu0 %v2197_v56  ;;  %v2227_v53 = vld [vmem:[#allocation5 + $0x2d0] ss:$20 sps:$4 sm:$0xff]  }
  0x6d   :  { %1109 = vmatprep.subr.bf16.mxu1 %v2183_v54  ;;  %v2230_v54 = vld [vmem:[#allocation5 + $0x2d8] ss:$20 sps:$4 sm:$0xff]  }
  0x6e   :  { %v2238_v56 = vld [vmem:[#allocation5 + $0x304] ss:$20 sps:$4 sm:$0xff]  }
  0x6f   :  { %1030 = vmatpush1.bf16.msra.mxu0 %v2202_v59  ;;  %v2241_v59 = vld [vmem:[#allocation5 + $0x324] ss:$20 sps:$4 sm:$0xff]  }
  0x70   :  { %1110 = vmatpush1.bf16.msra.mxu1 %v2181_v57  ;;  %1031 = vmatprep.subr.bf16.mxu0 %v2203_v2  ;;  %v2233_v57 = vld [vmem:[#allocation5 + $0x2f8] ss:$20 sps:$4 sm:$0xff]   ;;  %v2248_v2 = vld [vmem:[#allocation5 + $0x350] ss:$20 sps:$4 sm:$0xff]  }
  0x71   :  { %1111 = vmatprep.subr.bf16.mxu1 %v2189_v58  ;;  %v2236_v58 = vld [vmem:[#allocation5 + $0x300] ss:$20 sps:$4 sm:$0xff]  }
  0x73   :  { %1032 = vmatpush1.bf16.msra.mxu0 %v2208_v5  ;;  %v2251_v5 = vld [vmem:[#allocation5 + $0x370] ss:$20 sps:$4 sm:$0xff]  }
  0x74   :  { %1112 = vmatpush1.bf16.msra.mxu1 %v2187_v60  ;;  %1033 = vmatprep.subr.bf16.mxu0 %v2209_v6  ;;  %v2244_v60 = vld [vmem:[#allocation5 + $0x32c] ss:$20 sps:$4 sm:$0xff]  }
  0x75   :  { %1113 = vmatprep.subr.bf16.mxu1 %v2195_v61  ;;  %v2242_v61 = vld [vmem:[#allocation5 + $0x328] ss:$20 sps:$4 sm:$0xff]   ;;  %v2254_v6 = vld [vmem:[#allocation5 + $0x378] ss:$20 sps:$4 sm:$0xff]  }
  0x77   :  { %1034 = vmatpush1.bf16.msra.mxu0 %v2214_v9  ;;  %v2257_v9 = vld [vmem:[#allocation5 + $0x398] ss:$20 sps:$4 sm:$0xff]  }
  0x78   :  { %1114 = vmatpush1.bf16.msra.mxu1 %v2193_v62  ;;  %1046 = vmatprep.subr.bf16.mxu0 %v2217_v11  ;;  %v2247_v62 = vld [vmem:[#allocation5 + $0x34c] ss:$20 sps:$4 sm:$0xff]  }
  0x79   :  { %1115 = vmatprep.subr.bf16.mxu1 %v2201_v63  ;;  %v2250_v63 = vld [vmem:[#allocation5 + $0x354] ss:$20 sps:$4 sm:$0xff]  }
  0x7a   :  { %v2260_v11 = vld [vmem:[#allocation5 + $0x3a0] ss:$20 sps:$4 sm:$0xff]  }
  0x7c   :  { %1116 = vmatpush1.bf16.msra.mxu1 %v2199_v1  ;;  %v2245_v1 = vld [vmem:[#allocation5 + $0x348] ss:$20 sps:$4 sm:$0xff]  }
  0x7d   :  { %1117 = vmatprep.subr.bf16.mxu1 %v2207_v3  ;;  %v2253_v3 = vld [vmem:[#allocation5 + $0x374] ss:$20 sps:$4 sm:$0xff]  }
  0x80   :  { %1118 = vmatpush1.bf16.msra.mxu1 %v2205_v4  ;;  %v2256_v4 = vld [vmem:[#allocation5 + $0x37c] ss:$20 sps:$4 sm:$0xff]  }
  0x81   :  { %1119 = vmatprep.subr.bf16.mxu1 %v2213_v7  ;;  %v2259_v7 = vld [vmem:[#allocation5 + $0x39c] ss:$20 sps:$4 sm:$0xff]  }
  0x84   :  { %1120 = vmatpush1.bf16.msra.mxu1 %v2211_v8  ;;  %v2262_v8 = vld [vmem:[#allocation5 + $0x3a4] ss:$20 sps:$4 sm:$0xff]  }
  0x85   :  { %1132 = vmatprep.subr.bf16.mxu1 %v2220_v12  ;;  %v2263_v12 = vld [vmem:[#allocation5 + $0x150] ss:$20 sps:$4 sm:$0xff]  }
 0x112   :  { %v149_v20 = vpop.f32.mrb[0].mxu1 }
 0x113   :  { %v150_v21 = vadd.f32 %v149_v20, %v76_v18  ;;  %v151_v22 = vpop.f32.mrb[1].mxu1  ;;  %v2267_v20 = vld [vmem:[#allocation5 + $0x38] ss:$20 sps:$4 sm:$0xff]  }
 0x114   :  { %v152_v24 = vadd.f32 %v151_v22, %v80_v19  ;;  %v153_v25 = vpop.f32.mrb[2].mxu1  ;;  %v2269_v22 = vld [vmem:[#allocation5 + $0x1a0] ss:$20 sps:$4 sm:$0xff]  }
 0x115   :  { %v154_v26 = vadd.f32 %v153_v25, %v76_v18  ;;  %v155_v27 = vpop.f32.mrb[3].mxu1  ;;  %v199_v29 = vmax.f32 %v150_v21, 0.0  ;;  %v2265_v18 = vld [vmem:[#allocation5 + $0x290] ss:$20 sps:$4 sm:$0xff]   ;;  %v2268_v21 = vld [vmem:[#allocation5 + $0x2b8] ss:$20 sps:$4 sm:$0xff]  }
 0x116   :  { %v156_v28 = vadd.f32 %v155_v27, %v80_v19  ;;  %v200_v32 = vmax.f32 %v152_v24, 0.0  ;;  %v2266_v19 = vld [vmem:[#allocation5 + $0x178] ss:$20 sps:$4 sm:$0xff]   ;;  %v2270_v24 = vld [vmem:[#allocation5 + $0x60] ss:$20 sps:$4 sm:$0xff]  }
 0x117   :  { %v202_v30 = vmax.f32 %v154_v26, 0.0  ;;  %v2271_v25 = vld [vmem:[#allocation5 + $0x2e0] ss:$20 sps:$4 sm:$0xff]   ;;  %v2272_v26 = vld [vmem:[#allocation5 + $0x1c8] ss:$20 sps:$4 sm:$0xff]  }
 0x118   :  { %v203_v33 = vmax.f32 %v156_v28, 0.0  ;;  %v2273_v27 = vld [vmem:[#allocation5 + $0x88] ss:$20 sps:$4 sm:$0xff]  }
 0x119   :  { %v2546_v34 = vpack.c.bf16 %v202_v30, %v199_v29  ;;  %v2274_v28 = vld [vmem:[#allocation5 + $0x308] ss:$20 sps:$4 sm:$0xff]   ;;  %v2275_v29 = vld [vmem:[#allocation5 + $0x1f0] ss:$20 sps:$4 sm:$0xff]  }
 0x11a   :  { %v2548_v35 = vpack.c.bf16 %v203_v33, %v200_v32  ;;  %v192_v38 = vpop.f32.mrb[4].mxu1  ;;  %v2276_v30 = vld [vmem:[#allocation5 + $0xb0] ss:$20 sps:$4 sm:$0xff]   ;;  %v2278_v32 = vld [vmem:[#allocation5 + $0x218] ss:$20 sps:$4 sm:$0xff]  }
 0x11b   :  { %v193_v41 = vadd.f32 %v192_v38, %v84_v31  ;;  %v2046_v42 = vpop.f32.mrb[5].mxu1  ;;  %v2279_v33 = vld [vmem:[#allocation5 + $0xd8] ss:$20 sps:$4 sm:$0xff]   ;;  %v2283_v38 = vld [vmem:[#allocation5 + $0x380] ss:$20 sps:$4 sm:$0xff]  }
 0x11c   :  { %1035 = vmatprep.mubr.bf16.mxu0 %v2548_v35  ;;  %1121 = vmatprep.mubr.bf16.mxu1 %v2548_v35  ;;  %v195_v43 = vpop.f32.mrb[6].mxu1  ;;  %v2287_v42 = vld [vmem:[#allocation7 + $0x40] sm:$0xff]  }
 0x11d   :  { %1036 = vmatmul.mubr.bf16.vlgmr.msra.gmra.mrb[0].mxu0 %v2546_v34  ;;  %1122 = vmatmul.mubr.bf16.vlgmr.msra.gmra.mrb[8].mxu1 %v2546_v34  ;;  %v201_v44 = vmax.f32 %v193_v41, 0.0  ;;  %v196_v45 = vadd.f32 %v195_v43, %v84_v31  ;;  %v2047_v46 = vpop.f32.mrb[7].mxu1  ;;  %v2277_v31 = vld [vmem:[#allocation5 + $0x330] ss:$20 sps:$4 sm:$0xff]   ;;  %v2286_v41 = vld [vmem:[#allocation5 + $0x3a8] ss:$20 sps:$4 sm:$0xff]  }
 0x11e   :  { %1047 = vmatpush1.bf16.msra.mxu0 %v2215_v36  ;;  %1133 = vmatpush1.bf16.msra.mxu1 %v2218_v37  ;;  %v2281_v36 = vld [vmem:[#allocation5 + $0x240] ss:$20 sps:$4 sm:$0xff]   ;;  %v2291_v46 = vld [vmem:[#allocation7 + $0x48] sm:$0xff]  }
 0x11f   :  { %1048 = vmatprep.subr.bf16.mxu0 %v2223_v39  ;;  %1134 = vmatprep.subr.bf16.mxu1 %v2226_v40  ;;  %v204_v51 = vmax.f32 %v196_v45, 0.0  ;;  %v2282_v37 = vld [vmem:[#allocation5 + $0x100] ss:$20 sps:$4 sm:$0xff]   ;;  %v2284_v39 = vld [vmem:[#allocation5 + $0x268] ss:$20 sps:$4 sm:$0xff]  }
 0x120   :  { %1078 = vmatprep.mubr.bf16.mxu0 %v2436_v0  ;;  %1164 = vmatprep.mubr.bf16.mxu1 %v2436_v0  ;;  %v2239_v0 = vld [vmem:[#allocation5 + $0x320] ss:$20 sps:$4 sm:$0xff]   ;;  %v2285_v40 = vld [vmem:[#allocation5 + $0x128] ss:$20 sps:$4 sm:$0xff]  }
 0x121   :  { %v2556_v52 = vpack.c.bf16 %v204_v51, %v201_v44  ;;  %v2288_v43 = vld [vmem:[#allocation7 + $0xc0] sm:$0xff]   ;;  %v2296_v51 = vld [vmem:[#allocation7 + $0xd0] sm:$0xff]  }
 0x122   :  { %1049 = vmatpush1.bf16.msra.mxu0 %v2221_v47  ;;  %1135 = vmatpush1.bf16.msra.mxu1 %v2224_v48  ;;  %v2289_v44 = vld [vmem:[#allocation7] sm:$0xff]   ;;  %v2292_v47 = vld [vmem:[#allocation7 + $0xc8] sm:$0xff]  }
 0x123   :  { %1050 = vmatprep.subr.bf16.mxu0 %v2229_v49  ;;  %1136 = vmatprep.subr.bf16.mxu1 %v2232_v50  ;;  %v2290_v45 = vld [vmem:[#allocation7 + $0x80] sm:$0xff]   ;;  %v2293_v48 = vld [vmem:[#allocation7 + $0x8] sm:$0xff]   ;;  %v2295_v50 = vld [vmem:[#allocation7 + $0x50] sm:$0xff]  }
 0x124   :  { %v2294_v49 = vld [vmem:[#allocation7 + $0x88] sm:$0xff]  }
 0x126   :  { %1051 = vmatpush1.bf16.msra.mxu0 %v2227_v53  ;;  %1137 = vmatpush1.bf16.msra.mxu1 %v2230_v54  ;;  %v2297_v53 = vld [vmem:[#allocation7 + $0x10] sm:$0xff]  }
 0x127   :  { %1052 = vmatprep.subr.bf16.mxu0 %v2235_v55  ;;  %1138 = vmatprep.subr.bf16.mxu1 %v2238_v56  ;;  %v2298_v54 = vld [vmem:[#allocation7 + $0x90] sm:$0xff]   ;;  %v2299_v55 = vld [vmem:[#allocation7 + $0x58] sm:$0xff]  }
 0x128   :  { %v2300_v56 = vld [vmem:[#allocation7 + $0xd8] sm:$0xff]  }
 0x12a   :  { %1053 = vmatpush1.bf16.msra.mxu0 %v2233_v57  ;;  %1139 = vmatpush1.bf16.msra.mxu1 %v2236_v58  ;;  %v2303_v57 = vld [vmem:[#allocation7 + $0x60] sm:$0xff]  }
 0x12b   :  { %1054 = vmatprep.subr.bf16.mxu0 %v2241_v59  ;;  %1140 = vmatprep.subr.bf16.mxu1 %v2244_v60  ;;  %v2304_v58 = vld [vmem:[#allocation7 + $0xe0] sm:$0xff]  }
 0x12c   :  { %v2305_v59 = vld [vmem:[#allocation7 + $0x20] sm:$0xff]  }
 0x12d   :  { %v2306_v60 = vld [vmem:[#allocation7 + $0xa0] sm:$0xff]  }
 0x12e   :  { %1055 = vmatpush1.bf16.msra.mxu0 %v2239_v0  ;;  %1141 = vmatpush1.bf16.msra.mxu1 %v2242_v61  ;;  %v2307_v0 = vld [vmem:[#allocation7 + $0x68] sm:$0xff]  }
 0x12f   :  { %1056 = vmatprep.subr.bf16.mxu0 %v2247_v62  ;;  %1142 = vmatprep.subr.bf16.mxu1 %v2250_v63  ;;  %v2308_v61 = vld [vmem:[#allocation7 + $0xe8] sm:$0xff]  }
 0x130   :  { %v2309_v62 = vld [vmem:[#allocation7 + $0x28] sm:$0xff]  }
 0x131   :  { %v2310_v63 = vld [vmem:[#allocation7 + $0xa8] sm:$0xff]  }
 0x132   :  { %1057 = vmatpush1.bf16.msra.mxu0 %v2245_v1  ;;  %1143 = vmatpush1.bf16.msra.mxu1 %v2248_v2  ;;  %v2311_v1 = vld [vmem:[#allocation7 + $0x70] sm:$0xff]  }
 0x133   :  { %1058 = vmatprep.subr.bf16.mxu0 %v2253_v3  ;;  %1144 = vmatprep.subr.bf16.mxu1 %v2256_v4  ;;  %v2312_v2 = vld [vmem:[#allocation7 + $0xf0] sm:$0xff]  }
 0x134   :  { %v2313_v3 = vld [vmem:[#allocation7 + $0x30] sm:$0xff]  }
 0x135   :  { %v2314_v4 = vld [vmem:[#allocation7 + $0xb0] sm:$0xff]  }
 0x136   :  { %1059 = vmatpush1.bf16.msra.mxu0 %v2251_v5  ;;  %1145 = vmatpush1.bf16.msra.mxu1 %v2254_v6  ;;  %v2315_v5 = vld [vmem:[#allocation7 + $0x78] sm:$0xff]  }
 0x137   :  { %1060 = vmatprep.subr.bf16.mxu0 %v2259_v7  ;;  %1146 = vmatprep.subr.bf16.mxu1 %v2262_v8  ;;  %v2316_v6 = vld [vmem:[#allocation7 + $0xf8] sm:$0xff]  }
 0x138   :  { %v2317_v7 = vld [vmem:[#allocation7 + $0x38] sm:$0xff]  }
 0x139   :  { %v2318_v8 = vld [vmem:[#allocation7 + $0xb8] sm:$0xff]  }
 0x13a   :  { %1061 = vmatpush1.bf16.msra.mxu0 %v2257_v9  ;;  %1147 = vmatpush1.bf16.msra.mxu1 %v2260_v11  ;;  %v352_v9 = vld [vmem:[%s2621_s4] sm:$0x1f]  ;;  %v368_v11 = vsub.s32 3, %v2535_v14 }
 0x13b   :  { %1958 = vmatprep.subr.bf16.mxu0 %v2263_v12  ;;  %2048 = vmatprep.subr.bf16.mxu1 %v2437_v10  ;;  %v357_v12 = vrot.slane %v352_v9, %v75_v15 }
 0x13d   :  { %1079 = vmatmul.mubr.bf16.vlgmr.msra.gmra.mrb[0].mxu0 %v2556_v52  ;;  %1165 = vmatmul.mubr.bf16.vlgmr.msra.gmra.mrb[8].mxu1 %v2556_v52 }
 0x13e   :  { %1959 = vmatpush3.bf16.msra.mxu0 %v2264_v16  ;;  %1207 = vmatprep.mubr.bf16.mxu0 %v2548_v35  ;;  %v2280_v35 = vld [vmem:[#allocation5 + $0x358] ss:$20 sps:$4 sm:$0xff]   ;;  %v365_v16 = vrot.slane %v352_v9, %v83_v23 }
 0x13f   :  { %2049 = vmatpush3.bf16.msra.mxu1 %v2265_v18  ;;  %1960 = vmatprep.subr.bf16.mxu0 %v2266_v19  ;;  %v361_v18 = vrot.slane %v352_v9, %v79_v17  ;;  %v369_v19 = vrot.slane %v352_v9, %v368_v11  ;;  %v1902_v11 = vld [vmem:[%s2623_s6] ss:$0 sm:$0xff]  ;;  %s2439_s6 = smov [#allocation8]  }
 0x140   :  { %2050 = vmatprep.subr.bf16.mxu1 %v2437_v10  ;;  %2064 = vmatprep.mubr.msk.bf16.mxu1 %vm2438_vm2, %v2437_v10  ;;  %s1762_s23 = sshll.u32 %s2439_s6, 4  ;;  %s1763_s23 = int_to_ptr.vmem [resolvable:$true] %s1762_s23 }
 0x141   :  { %s2401_s24 = scalar_lea.vmem %s1763_s23, 128  ;;  %p2406_p11 = scmp.lt.s32.totalorder %s1763_s23, %s1763_s23 }
 0x142   :  { %1961 = vmatpush3.bf16.msra.mxu0 %v2267_v20  ;;  %p2402_p10 = scmp.ne.s32.totalorder %s1763_s23, %s2401_s24  ;;  %p2407_p12 = scmp.lt.s32.totalorder %s2401_s24, %s2401_s24 }
 0x143   :  { %2051 = vmatpush3.bf16.msra.mxu1 %v2268_v21  ;;  %1962 = vmatprep.subr.bf16.mxu0 %v2269_v22 }
 0x144   :  { %2052 = vmatprep.subr.bf16.mxu1 %v2437_v10  ;;  %p2408_p13 = por %p2407_p12, %p2406_p11 }
 0x146   :  { %1963 = vmatpush3.bf16.msra.mxu0 %v2270_v24  ;;  %p2409_p0 = pnand %p2408_p13, %p2402_p10 }
 0x147   :  { %2053 = vmatpush3.bf16.msra.mxu1 %v2271_v25  ;;  %1964 = vmatprep.subr.bf16.mxu0 %v2272_v26 }
 0x148   :  { %2054 = vmatprep.subr.bf16.mxu1 %v2437_v10 }
 0x14a   :  { %1965 = vmatpush3.bf16.msra.mxu0 %v2273_v27 }
 0x14b   :  { %2055 = vmatpush3.bf16.msra.mxu1 %v2274_v28  ;;  %1966 = vmatprep.subr.bf16.mxu0 %v2275_v29 }
 0x14c   :  { %2056 = vmatprep.subr.bf16.mxu1 %v2437_v10 }
 0x14e   :  { %1967 = vmatpush3.bf16.msra.mxu0 %v2276_v30 }
 0x14f   :  { %2057 = vmatpush3.bf16.msra.mxu1 %v2277_v31  ;;  %1968 = vmatprep.subr.bf16.mxu0 %v2278_v32 }
 0x150   :  { %2058 = vmatprep.subr.bf16.mxu1 %v2437_v10 }
 0x152   :  { %1969 = vmatpush3.bf16.msra.mxu0 %v2279_v33 }
 0x153   :  { %2059 = vmatpush3.bf16.msra.mxu1 %v2280_v35  ;;  %1970 = vmatprep.subr.bf16.mxu0 %v2281_v36 }
 0x154   :  { %2060 = vmatprep.subr.bf16.mxu1 %v2437_v10 }
 0x156   :  { %1971 = vmatpush3.bf16.msra.mxu0 %v2282_v37 }
 0x157   :  { %2061 = vmatpush3.bf16.msra.mxu1 %v2283_v38  ;;  %1972 = vmatprep.subr.bf16.mxu0 %v2284_v39 }
 0x158   :  { %2062 = vmatprep.subr.bf16.mxu1 %v2437_v10 }
 0x15a   :  { %1973 = vmatpush3.bf16.msra.mxu0 %v2285_v40 }
 0x15b   :  { %2063 = vmatpush3.bf16.msra.mxu1 %v2286_v41  ;;  %1989 = vmatprep.subr.bf16.mxu0 %v2287_v42 }
 0x15c   :  { %2011 = vmatprep.subr.bf16.mxu1 %v2288_v43 }
 0x15d   :  { %1208 = vmatmul.mubr.bf16.vlgmr.msra.gmra.mrb[4].mxu0 %v2546_v34  ;;  %v2301_v34 = vld [vmem:[#allocation7 + $0x18] sm:$0xff]  }
 0x15e   :  { %2065 = vmatmul.mubr.bf16.vlgmr.msra.gmra.mrb[12].mxu1 %v2556_v52  ;;  %1990 = vmatpush3.bf16.msra.mxu0 %v2289_v44  ;;  %v2302_v52 = vld [vmem:[#allocation7 + $0x98] sm:$0xff]  }
 0x15f   :  { %2012 = vmatpush3.bf16.msra.mxu1 %v2290_v45  ;;  %1991 = vmatprep.subr.bf16.mxu0 %v2291_v46 }
 0x160   :  { %2013 = vmatprep.subr.bf16.mxu1 %v2292_v47  ;;  %v2319_v47 = vld [vmem:[#allocation7 + $0x100] sm:$0xff]  }
 0x162   :  { %1992 = vmatpush3.bf16.msra.mxu0 %v2293_v48  ;;  %v2320_v48 = vld [vmem:[#allocation7 + $0x108] sm:$0xff]  }
 0x163   :  { %2014 = vmatpush3.bf16.msra.mxu1 %v2294_v49  ;;  %1993 = vmatprep.subr.bf16.mxu0 %v2295_v50  ;;  %v2321_v49 = vld [vmem:[#allocation7 + $0x110] sm:$0xff]   ;;  %v2322_v50 = vld [vmem:[#allocation7 + $0x118] sm:$0xff]  }
 0x164   :  { %2015 = vmatprep.subr.bf16.mxu1 %v2296_v51  ;;  %v2323_v51 = vld [vmem:[#allocation7 + $0x120] sm:$0xff]  }
 0x166   :  { %1994 = vmatpush3.bf16.msra.mxu0 %v2297_v53  ;;  %v372_v53 = vsub.s32 4, %v2535_v14  ;;  %v2326_v14 = vld [vmem:[#allocation7 + $0x138] sm:$0xff]  }
 0x167   :  { %2016 = vmatpush3.bf16.msra.mxu1 %v2298_v54  ;;  %1995 = vmatprep.subr.bf16.mxu0 %v2299_v55  ;;  %v2324_v54 = vld [vmem:[#allocation7 + $0x128] sm:$0xff]  }
 0x168   :  { %2017 = vmatprep.subr.bf16.mxu1 %v2300_v56  ;;  %v373_v56 = vrot.slane %v352_v9, %v372_v53 }
 0x16a   :  { %1996 = vmatpush3.bf16.msra.mxu0 %v2301_v34  ;;  %v2325_v34 = vld [vmem:[#allocation7 + $0x130] sm:$0xff]  }
 0x16b   :  { %2018 = vmatpush3.bf16.msra.mxu1 %v2302_v52  ;;  %1997 = vmatprep.subr.bf16.mxu0 %v2303_v57 }
 0x16c   :  { %2019 = vmatprep.subr.bf16.mxu1 %v2304_v58 }
 0x16e   :  { %1998 = vmatpush3.bf16.msra.mxu0 %v2305_v59 }
 0x16f   :  { %2020 = vmatpush3.bf16.msra.mxu1 %v2306_v60  ;;  %1999 = vmatprep.subr.bf16.mxu0 %v2307_v0 }
 0x170   :  { %2021 = vmatprep.subr.bf16.mxu1 %v2308_v61 }
 0x172   :  { %2000 = vmatpush3.bf16.msra.mxu0 %v2309_v62 }
 0x173   :  { %2022 = vmatpush3.bf16.msra.mxu1 %v2310_v63  ;;  %2001 = vmatprep.subr.bf16.mxu0 %v2311_v1 }
 0x174   :  { %2023 = vmatprep.subr.bf16.mxu1 %v2312_v2 }
 0x176   :  { %2002 = vmatpush3.bf16.msra.mxu0 %v2313_v3 }
 0x177   :  { %2024 = vmatpush3.bf16.msra.mxu1 %v2314_v4  ;;  %2003 = vmatprep.subr.bf16.mxu0 %v2315_v5 }
 0x178   :  { %2025 = vmatprep.subr.bf16.mxu1 %v2316_v6 }
 0x17a   :  { %2004 = vmatpush3.bf16.msra.mxu0 %v2317_v7 }
 0x17b   :  { %2026 = vmatpush3.bf16.msra.mxu1 %v2318_v8  ;;  %2068 = vmatprep.subr.bf16.mxu0 %v2437_v10 }
 0x210   :  { %v1080_v20 = vpop.f32.mrb[0].mxu0  ;;  %v1166_v21 = vpop.f32.mrb[8].mxu1 }
 0x211   :  { %v2088_v22 = vadd.f32 %v1080_v20, %v357_v12  ;;  %v2092_v24 = vadd.f32 %v1166_v21, %v365_v16  ;;  %v1082_v25 = vpop.f32.mrb[1].mxu0  ;;  %v1168_v26 = vpop.f32.mrb[9].mxu1 }
 0x212   :  { %v2089_v27 = vadd.f32 %v1082_v25, %v361_v18  ;;  %v2093_v28 = vadd.f32 %v1168_v26, %v369_v19  ;;  %v1084_v29 = vpop.f32.mrb[2].mxu0  ;;  %v1170_v30 = vpop.f32.mrb[10].mxu1 }
 0x213   :  { %v2090_v31 = vadd.f32 %v1084_v29, %v357_v12  ;;  %v2094_v32 = vadd.f32 %v1170_v30, %v365_v16  ;;  %v1086_v15 = vpop.f32.mrb[3].mxu0  ;;  %v1172_v33 = vpop.f32.mrb[11].mxu1  ;;  %v1257_v36 = vmax.f32 %v2088_v22, 0.0  ;;  %v1259_v37 = vmax.f32 %v2092_v24, 0.0 }
 0x214   :  { %v2091_v35 = vadd.f32 %v1086_v15, %v361_v18  ;;  %v2095_v23 = vadd.f32 %v1172_v33, %v369_v19  ;;  %v1258_v39 = vmax.f32 %v2089_v27, 0.0  ;;  %v1260_v40 = vmax.f32 %v2093_v28, 0.0 }
 0x215   :  { %v1262_v17 = vmax.f32 %v2090_v31, 0.0  ;;  %v1264_v38 = vmax.f32 %v2094_v32, 0.0  ;;  %v1723_v31 = vand.u32 127, %v73_v13 }
 0x216   :  { %v1263_v41 = vmax.f32 %v2091_v35, 0.0  ;;  %v1265_v42 = vmax.f32 %v2095_v23, 0.0 }
 0x217   :  { %v1267_v43 = vpack.c.bf16 %v1262_v17, %v1257_v36  ;;  %v1269_v44 = vpack.c.bf16 %v1264_v38, %v1259_v37  ;;  %vm1724_vm3 = vcmp.lt.s32.totalorder %v1723_v31, 4 }
 0x218   :  { %v1268_v45 = vpack.c.bf16 %v1263_v41, %v1258_v39  ;;  %v1270_v46 = vpack.c.bf16 %v1265_v42, %v1260_v40 }
 0x21a   :  { %1631 = vmatprep.mubr.bf16.mxu0 %v1268_v45  ;;  %1672 = vmatprep.mubr.bf16.mxu1 %v1270_v46 }
 0x21b   :  { %1632 = vmatmul.mubr.bf16.vlgmr.msra.gmra.mrb[8].mxu0 %v1267_v43  ;;  %1673 = vmatmul.mubr.bf16.vlgmr.msra.gmra.mrb[16].mxu1 %v1269_v44 }
 0x21c   :  { %2069 = vmatpush3.bf16.msra.mxu0 %v2319_v47  ;;  %2084 = vmatprep.mubr.msk.bf16.mxu0 %vm2438_vm2, %v2437_v10 }
 0x21d   :  { %2070 = vmatprep.subr.bf16.mxu0 %v2437_v10 }
 0x220   :  { %2071 = vmatpush3.bf16.msra.mxu0 %v2320_v48 }
 0x221   :  { %2072 = vmatprep.subr.bf16.mxu0 %v2437_v10 }
 0x224   :  { %2073 = vmatpush3.bf16.msra.mxu0 %v2321_v49 }
 0x225   :  { %2074 = vmatprep.subr.bf16.mxu0 %v2437_v10 }
 0x228   :  { %2075 = vmatpush3.bf16.msra.mxu0 %v2322_v50 }
 0x229   :  { %2076 = vmatprep.subr.bf16.mxu0 %v2437_v10 }
 0x22c   :  { %2077 = vmatpush3.bf16.msra.mxu0 %v2323_v51 }
 0x22d   :  { %2078 = vmatprep.subr.bf16.mxu0 %v2437_v10 }
 0x230   :  { %v1974_v55 = vpop.f32.mrb[4].mxu0  ;;  %2079 = vmatpush3.bf16.msra.mxu0 %v2324_v54 }
 0x231   :  { %v1250_v52 = vpop.f32.mrb[12].mxu1  ;;  %v1975_v57 = vpop.f32.mrb[5].mxu0  ;;  %2080 = vmatprep.subr.bf16.mxu0 %v2437_v10 }
 0x232   :  { %v1976_v58 = vadd.f32 %v1975_v57, %v1974_v55  ;;  %v2066_v59 = vpop.f32.mrb[13].mxu1  ;;  %v1977_v60 = vpop.f32.mrb[6].mxu0 }
 0x233   :  { %v1253_v0 = vpop.f32.mrb[14].mxu1  ;;  %v1978_v61 = vpop.f32.mrb[7].mxu0 }
 0x234   :  { %v1210_v62 = vadd.f32 %v1976_v58, %v373_v56  ;;  %v1979_v63 = vadd.f32 %v1978_v61, %v1977_v60  ;;  %v2067_v1 = vpop.f32.mrb[15].mxu1  ;;  %2081 = vmatpush3.bf16.msra.mxu0 %v2325_v34 }
 0x235   :  { %2082 = vmatprep.subr.bf16.mxu0 %v2437_v10 }
 0x236   :  { %v1251_v2 = vadd.f32 %v1250_v52, %v1210_v62  ;;  %v1213_v3 = vadd.f32 %v1979_v63, %v373_v56 }
 0x238   :  { %v1254_v4 = vadd.f32 %v1253_v0, %v1213_v3  ;;  %2083 = vmatpush3.bf16.msra.mxu0 %v2326_v14  ;;  %v1261_v5 = vmax.f32 %v1251_v2, 0.0 }
 0x23a   :  { %v1266_v6 = vmax.f32 %v1254_v4, 0.0 }
 0x23c   :  { %v1271_v7 = vpack.c.bf16 %v1266_v6, %v1261_v5 }
 0x23e   :  { %2085 = vmatmul.mubr.bf16.vlgmr.msra.gmra.mrb[12].mxu0 %v1271_v7 }
 0x2ee   :  { %v2005_v8 = vpop.f32.mrb[8].mxu0  ;;  %v2027_v9 = vpop.f32.mrb[16].mxu1 }
 0x2ef   :  { %v2006_v12 = vpop.f32.mrb[9].mxu0  ;;  %v2028_v16 = vpop.f32.mrb[17].mxu1 }
 0x2f0   :  { %v2007_v18 = vadd.f32 %v2006_v12, %v2005_v8  ;;  %v2029_v19 = vadd.f32 %v2028_v16, %v2027_v9  ;;  %v2008_v20 = vpop.f32.mrb[10].mxu0  ;;  %v2030_v10 = vpop.f32.mrb[18].mxu1 }
 0x2f1   :  { %v2009_v21 = vpop.f32.mrb[11].mxu0  ;;  %v2031_v22 = vpop.f32.mrb[19].mxu1 }
 0x2f2   :  { %v1634_v24 = vadd.f32 %v2007_v18, %v1902_v11  ;;  %v2010_v25 = vadd.f32 %v2009_v21, %v2008_v20  ;;  %v2032_v26 = vadd.f32 %v2031_v22, %v2030_v10 }
 0x2f4   :  { %v1637_v27 = vadd.f32 %v2010_v25, %v1902_v11  ;;  %v1675_v28 = vadd.f32 %v2029_v19, %v1634_v24 }
 0x2f6   :  { %v1678_v29 = vadd.f32 %v2032_v26, %v1637_v27 }
 0x311   :  { %v1715_v30 = vpop.f32.mrb[12].mxu0 }
 0x312   :  { %v1716_v32 = vadd.f32 %v1715_v30, %v1675_v28  ;;  %v2086_v15 = vpop.f32.mrb[13].mxu0 }
 0x313   :  { %v1718_v33 = vpop.f32.mrb[14].mxu0 }
 0x314   :  { %v1725_v35 = vmul.f32 2.0, %v1716_v32  ;;  %v1719_v23 = vadd.f32 %v1718_v33, %v1678_v29  ;;  %v2087_v36 = vpop.f32.mrb[15].mxu0 }
 0x316   :  { %v1943_v37 = vclamps-f32 %v1725_v35, 40.0  ;;  %v1726_v17 = vmul.f32 2.0, %v1719_v23 }
 0x318   :  { %v1731_v38 = vsel %vm1724_vm3, %v1943_v37, %v1716_v32  ;;  %v1944_v39 = vclamps-f32 %v1726_v17, 40.0 }
 0x319   :  { %v1733_v40 = vmul.f32 1.442695, %v1731_v38 }
 0x31a   :  { %v1732_v41 = vsel %vm1724_vm3, %v1944_v39, %v1719_v23 }
 0x31b   :  { %2327 = vpow2.f32 %v1733_v40  ;;  %v1735_v42 = vmul.f32 1.442695, %v1732_v41 }
 0x31d   :  { %2329 = vpow2.f32 %v1735_v42 }
 0x325   :  { %v2328_v43 = vpop.eup %2327 }
 0x326   :  { %v1739_v13 = vadd.f32 1.0, %v2328_v43  ;;  %v1945_v46 = vadd.f32 -1.0, %v2328_v43 }
 0x327   :  { %v2330_v44 = vpop.eup %2329 }
 0x328   :  { %v1740_v45 = vadd.f32 1.0, %v2330_v44  ;;  %2331 = vrcp.f32 %v1739_v13  ;;  %v1946_v48 = vadd.f32 -1.0, %v2330_v44 }
 0x32a   :  { %2333 = vrcp.f32 %v1740_v45 }
 0x332   :  { %v2332_v47 = vpop.eup %2331 }
 0x333   :  { %v1743_v49 = vmul.f32 %v2332_v47, %v1945_v46 }
 0x334   :  { %v2334_v50 = vpop.eup %2333 }
 0x335   :  { %v1744_v51 = vmul.f32 %v2334_v50, %v1946_v48  ;;  %v1745_v53 = vsel %vm1724_vm3, %v1743_v49, %v1739_v13 }
 0x337   :  { %v1746_v54 = vsel %vm1724_vm3, %v1744_v51, %v1740_v45 }
 0x338   :  { %v1954_v55 = vpack.c.bf16 %v1746_v54, %v1745_v53 }
 0x33a   :  { %1955 = vst [vmem:[#allocation8] sm:$0xff] %v1954_v55  }
 0x33b   :  { %2412 = shalt.err (!%p2409_p0)
}
 0x33c   :  { %s2413_s25 = scalar_lea.hbm %s2624_s7, 128 }
 0x33d   :  { %p2414_p1 = scmp.ne.s32.totalorder %s2624_s7, %s2413_s25  ;;  %p2417_p2 = scmp.lt.u32.totalorder %s2413_s25, %s2624_s7 }
 0x33f   :  { %p2419_p3 = pnand %p2417_p2, %p2414_p1 }
 0x341   :  { %2422 = shalt.err (!%p2419_p3)
}
 0x342   :  { %1768 = dma.vmem_to_hbm [thread:$0]  %s1763_s23, 128, %s2624_s7, [#allocation4], %s2434_s2, %s2434_s2, %s2435_s14  }
 0x343   :  { %2427 = dma.done.wait [#allocation4], 128  }
 0x344   :  { %2428 = vsyncadd [#allocation4], 4294967168 }
 0x345   :  { %1772 = vsyncpa [#allocation3], 1 }
 0x346   :  { %1773 = vsyncpa [#allocation6], 1 }
 0x347   :  { %1774 = vsyncpa [#allocation4], 1 }

</bundles_post_ra>
